<compile_context>
chip_gen: v6e
topology: v6e:2x2x1
jax: 0.10.0
libtpu: 0.0.40
codegen_flags: <defaults>
</compile_context>

<pallas_src>
import functools

import jax
import jax.numpy as jnp
from jax import lax
from jax.experimental import pallas as pl
from jax.experimental.pallas import tpu as pltpu

ALPHA = 0.5
GAMMA = 1.0
FACTOR = 200.0

_LANES = 128
_SUBLANES = 8
_MAX_ROW_TILE = 2048   # 2048 x 128 f32 = 1 MiB per input tile


def _pow(x, g):
    # GAMMA == 1.0 statically -> exact identity (matches torch.pow(x, 1.0)).
    if g == 1.0:
        return x
    return jnp.power(x, g)


def _focal_kernel(pred_ref, targ_ref, out_ref, *, rows, row_tile,
                  needs_row_mask, pos_scale, neg_scale):
    k = pl.program_id(0)

    @pl.when(k == 0)
    def _():
        out_ref[...] = jnp.zeros_like(out_ref)

    p = pred_ref[...].astype(jnp.float32)
    t = targ_ref[...].astype(jnp.float32)

    # Numerically stable, 3 EUP transcendentals per element:
    #   e = exp(-|p|)                      (EUP)
    #   L = log1p(e)                       (EUP)
    #   log sigma(p)  = min(p, 0) - L
    #   log sigma(-p) = -max(p, 0) - L
    #   r = 1 / (1 + e)                    (EUP)
    #   sigma(p)     = r     if p >= 0 else e*r
    #   1 - sigma(p) = e*r   if p >= 0 else r
    e = jnp.exp(-jnp.abs(p))
    log1p_e = jnp.log1p(e)
    log_sig = jnp.minimum(p, 0.0) - log1p_e
    log_sig_inv = -jnp.maximum(p, 0.0) - log1p_e
    # approx=True (vrcp) is cheaper but may miss the 1e-5 tolerance vs the
    # float32 reference; keep the exact reciprocal (still EUP).
    r = pl.reciprocal(1.0 + e, approx=False)
    er = e * r
    nonneg = p >= 0.0
    sig = jnp.where(nonneg, r, er)
    one_minus_sig = jnp.where(nonneg, er, r)

    term_pos = _pow(one_minus_sig, GAMMA) * log_sig
    term_neg = _pow(sig, GAMMA) * log_sig_inv
    if pos_scale != 1.0:           # statically folded away for ALPHA == 0.5
        term_pos = term_pos * pos_scale
    if neg_scale != 1.0:
        term_neg = term_neg * neg_scale

    loss = (jnp.where(t == 1.0, term_pos, 0.0)
            + jnp.where(t == 0.0, term_neg, 0.0))

    if needs_row_mask:
        # Only compiled when the last grid step covers a partial block
        # (rows % row_tile != 0): zero the garbage rows of that block.
        valid_rows = rows - k * row_tile          # >= row_tile except last step
        row_idx = lax.broadcasted_iota(jnp.int32, (row_tile, _LANES), 0)
        loss = jnp.where(row_idx < valid_rows, loss, 0.0)

    # Pure-VPU fold of (row_tile, 128) -> (8, 128) onto the resident output
    # block (layout-preserving reshape, no cross-lane reduce on carried path).
    full_groups = row_tile // _SUBLANES
    r8 = full_groups * _SUBLANES
    if full_groups > 0:
        out_ref[...] += loss[:r8].reshape(full_groups, _SUBLANES, _LANES).sum(axis=0)
    leftover = row_tile - r8                       # 0..7, only for small inputs
    if leftover > 0:
        out_ref[0:leftover, :] += loss[r8:row_tile, :]


def _elementwise_loss(p, t, pos_scale, neg_scale):
    """Unscaled focal terms (XLA path for the <128-element ragged tail)."""
    sig = jax.nn.sigmoid(p)
    ls = jax.nn.log_sigmoid(p)
    lsi = jax.nn.log_sigmoid(-p)
    tp = _pow(1.0 - sig, GAMMA) * ls
    tn = _pow(sig, GAMMA) * lsi
    if pos_scale != 1.0:
        tp = tp * pos_scale
    if neg_scale != 1.0:
        tn = tn * neg_scale
    return jnp.where(t == 1.0, tp, 0.0) + jnp.where(t == 0.0, tn, 0.0)


def focal_loss_with_logits_neg_loss(pred, target):
    """Pallas TPU implementation of FocalLossWithLogitsNegLoss.forward."""
    n_total = pred.size
    pred_flat = pred.reshape(-1)
    targ_flat = target.reshape(-1)

    rows = n_total // _LANES          # full lane-dense rows
    n_kernel = rows * _LANES

    if ALPHA == 0.5:
        # ALPHA == 1 - ALPHA: drop both in-kernel multiplies, fold 0.5 into
        # the scalar epilogue.
        pos_scale = neg_scale = 1.0
        epilogue_scale = -(ALPHA * FACTOR) / n_total
    else:
        pos_scale, neg_scale = ALPHA, 1.0 - ALPHA
        epilogue_scale = -FACTOR / n_total

    total = jnp.float32(0.0)

    if rows > 0:
        # Bitcast reshape when n % 128 == 0 (no copy, no jnp.pad).
        # TODO(synk): for truly ragged n (n % 128 != 0) the [:n_kernel] slice
        # materializes one slab copy before the mem-bound kernel.
        pred2d = pred_flat[:n_kernel].reshape(rows, _LANES)
        targ2d = targ_flat[:n_kernel].reshape(rows, _LANES)

        row_tile = min(_MAX_ROW_TILE, rows)        # == rows (full dim) or 2048
        steps = pl.cdiv(rows, row_tile)
        needs_row_mask = (rows % row_tile) != 0    # partial last block only

        kernel = functools.partial(
            _focal_kernel, rows=rows, row_tile=row_tile,
            needs_row_mask=needs_row_mask,
            pos_scale=pos_scale, neg_scale=neg_scale)

        elem_bytes = pred.dtype.itemsize + target.dtype.itemsize
        cost = pl.CostEstimate(
            flops=18 * n_kernel,
            transcendentals=3 * n_kernel,
            bytes_accessed=elem_bytes * n_kernel + 4 * _SUBLANES * _LANES,
        )

        partials = pl.pallas_call(
            kernel,
            out_shape=jax.ShapeDtypeStruct((_SUBLANES, _LANES), jnp.float32),
            grid_spec=pltpu.PrefetchScalarGridSpec(
                num_scalar_prefetch=0,
                grid=(steps,),
                in_specs=[
                    pl.BlockSpec((row_tile, _LANES), lambda k: (k, 0)),
                    pl.BlockSpec((row_tile, _LANES), lambda k: (k, 0)),
                ],
                out_specs=pl.BlockSpec((_SUBLANES, _LANES), lambda k: (0, 0)),
            ),
            compiler_params=pltpu.CompilerParams(
                dimension_semantics=("arbitrary",),
            ),
            cost_estimate=cost,
        )(pred2d, targ2d)
        total = total + jnp.sum(partials)

    if n_kernel < n_total:
        # <128-element ragged tail: tiny XLA reduction instead of padding.
        p_tail = pred_flat[n_kernel:].astype(jnp.float32)
        t_tail = targ_flat[n_kernel:].astype(jnp.float32)
        total = total + jnp.sum(
            _elementwise_loss(p_tail, t_tail, pos_scale, neg_scale))

    return total * jnp.float32(epilogue_scale)


def _reference(pred, target):
    pred = pred.astype(jnp.float32)
    target = target.astype(jnp.float32)
    sig = jax.nn.sigmoid(pred)
    ls = jax.nn.log_sigmoid(pred)
    ls_inv = jax.nn.log_sigmoid(-pred)
    loss = (target == 1.0) * ALPHA * _pow(1.0 - sig, GAMMA) * ls
    loss = loss + (target == 0.0) * (1.0 - ALPHA) * _pow(sig, GAMMA) * ls_inv
    return -jnp.mean(loss) * FACTOR


if __name__ == "__main__":
    key = jax.random.PRNGKey(0)
    k_pred, k_targ = jax.random.split(key)
    # Shapes consistent with a dense-prediction focal loss: NCHW logits + {0,1} targets.
    shape = (2, 4, 16, 16)
    pred = jax.random.normal(k_pred, shape, dtype=jnp.float32) * 2.0
    target = jax.random.bernoulli(k_targ, p=0.3, shape=shape).astype(jnp.float32)

    out = focal_loss_with_logits_neg_loss(pred, target)
    out = jax.block_until_ready(out)

    ref = _reference(pred, target)
    assert jnp.allclose(out, ref, rtol=1e-5, atol=1e-5), (out, ref)
    print("KERNEL_OK")
</pallas_src>

<mosaic_0001>
module attributes {stable_mosaic.version = 11 : i64} {
  func.func @_focal_kernel(%arg0: i32, %arg1: memref<16x128xf32, #tpu.memory_space<vmem>>, %arg2: memref<16x128xf32, #tpu.memory_space<vmem>>, %arg3: memref<8x128xf32, #tpu.memory_space<vmem>>) attributes {dimension_semantics = [#tpu.dimension_semantics<arbitrary>], iteration_bounds = array<i64: 1>, scalar_prefetch = 0 : i64, scratch_operands = 0 : i64, tpu.core_type = #tpu.core_type<tc>, window_params = [{transform_indices = @transform_0, window_bounds = array<i64: 16, 128>}, {transform_indices = @transform_1, window_bounds = array<i64: 16, 128>}, {pipeline_mode = #tpu.pipeline_mode<synchronous>, transform_indices = @transform_2, window_bounds = array<i64: 8, 128>}]} {
    %c0_i32 = arith.constant 0 : i32
    %0 = arith.cmpi eq, %arg0, %c0_i32 : i32
    %1 = arith.extui %0 : i1 to i32
    %c0_i32_0 = arith.constant 0 : i32
    %2 = arith.cmpi ne, %1, %c0_i32_0 : i32
    scf.if %2 {
      %cst_18 = arith.constant 0.000000e+00 : f32
      %42 = vector.broadcast %cst_18 : f32 to vector<8x128xf32>
      %c0_19 = arith.constant 0 : index
      %c0_20 = arith.constant 0 : index
      %43 = vector.load %arg3[%c0_19, %c0_20] : memref<8x128xf32, #tpu.memory_space<vmem>>, vector<8x128xf32>
      tpu.vector_store %arg3[%c0_19, %c0_20], %42 {strides = array<i32>} : memref<8x128xf32, #tpu.memory_space<vmem>>, vector<8x128xf32>,
    } else {
    }
    %c0 = arith.constant 0 : index
    %c0_1 = arith.constant 0 : index
    %3 = vector.load %arg1[%c0, %c0_1] : memref<16x128xf32, #tpu.memory_space<vmem>>, vector<16x128xf32>
    %c0_2 = arith.constant 0 : index
    %c0_3 = arith.constant 0 : index
    %4 = vector.load %arg2[%c0_2, %c0_3] : memref<16x128xf32, #tpu.memory_space<vmem>>, vector<16x128xf32>
    %5 = math.absf %3 : vector<16x128xf32>
    %cst = arith.constant 0.000000e+00 : f32
    %6 = vector.broadcast %cst : f32 to vector<16x128xf32>
    %7 = arith.subf %6, %5 : vector<16x128xf32>
    %8 = math.exp %7 : vector<16x128xf32>
    %9 = math.log1p %8 : vector<16x128xf32>
    %cst_4 = arith.constant 0.000000e+00 : f32
    %10 = vector.broadcast %cst_4 : f32 to vector<16x128xf32>
    %11 = arith.minimumf %3, %10 : vector<16x128xf32>
    %12 = arith.subf %11, %9 : vector<16x128xf32>
    %cst_5 = arith.constant 0.000000e+00 : f32
    %13 = vector.broadcast %cst_5 : f32 to vector<16x128xf32>
    %14 = arith.maximumf %3, %13 : vector<16x128xf32>
    %cst_6 = arith.constant 0.000000e+00 : f32
    %15 = vector.broadcast %cst_6 : f32 to vector<16x128xf32>
    %16 = arith.subf %15, %14 : vector<16x128xf32>
    %17 = arith.subf %16, %9 : vector<16x128xf32>
    %cst_7 = arith.constant 1.000000e+00 : f32
    %18 = vector.broadcast %cst_7 : f32 to vector<16x128xf32>
    %19 = arith.addf %18, %8 : vector<16x128xf32>
    %20 = tpu.reciprocal %19 : vector<16x128xf32> -> vector<16x128xf32>
    %21 = arith.mulf %8, %20 : vector<16x128xf32>
    %cst_8 = arith.constant 0.000000e+00 : f32
    %22 = vector.broadcast %cst_8 : f32 to vector<16x128xf32>
    %23 = arith.cmpf oge, %3, %22 : vector<16x128xf32>
    %24 = arith.select %23, %20, %21 : vector<16x128xi1>, vector<16x128xf32>
    %25 = arith.select %23, %21, %20 : vector<16x128xi1>, vector<16x128xf32>
    %26 = arith.mulf %25, %12 : vector<16x128xf32>
    %27 = arith.mulf %24, %17 : vector<16x128xf32>
    %cst_9 = arith.constant 1.000000e+00 : f32
    %28 = vector.broadcast %cst_9 : f32 to vector<16x128xf32>
    %29 = arith.cmpf oeq, %4, %28 : vector<16x128xf32>
    %cst_10 = arith.constant 0.000000e+00 : f32
    %30 = vector.broadcast %cst_10 : f32 to vector<16x128xf32>
    %31 = arith.select %29, %26, %30 : vector<16x128xi1>, vector<16x128xf32>
    %cst_11 = arith.constant 0.000000e+00 : f32
    %32 = vector.broadcast %cst_11 : f32 to vector<16x128xf32>
    %33 = arith.cmpf oeq, %4, %32 : vector<16x128xf32>
    %cst_12 = arith.constant 0.000000e+00 : f32
    %34 = vector.broadcast %cst_12 : f32 to vector<16x128xf32>
    %35 = arith.select %33, %27, %34 : vector<16x128xi1>, vector<16x128xf32>
    %36 = arith.addf %31, %35 : vector<16x128xf32>
    %c0_13 = arith.constant 0 : index
    %c0_14 = arith.constant 0 : index
    %37 = vector.load %arg3[%c0_13, %c0_14] : memref<8x128xf32, #tpu.memory_space<vmem>>, vector<8x128xf32>
    %38 = vector.shape_cast %36 : vector<16x128xf32> to vector<2x8x128xf32>
    %cst_15 = arith.constant dense<0.000000e+00> : vector<8x128xf32>
    %39 = vector.multi_reduction <add>, %38, %cst_15 [0] : vector<2x8x128xf32> to vector<8x128xf32>
    %40 = arith.addf %37, %39 : vector<8x128xf32>
    %c0_16 = arith.constant 0 : index
    %c0_17 = arith.constant 0 : index
    %41 = vector.load %arg3[%c0_16, %c0_17] : memref<8x128xf32, #tpu.memory_space<vmem>>, vector<8x128xf32>
    tpu.vector_store %arg3[%c0_16, %c0_17], %40 {strides = array<i32>} : memref<8x128xf32, #tpu.memory_space<vmem>>, vector<8x128xf32>,
    return
  }
  func.func @transform_0(%arg0: i32) -> (i32, i32) {
    %c0_i32 = arith.constant 0 : i32
    %c0_i32_0 = arith.constant 0 : i32
    return %arg0, %c0_i32 : i32, i32
  }
  func.func @transform_1(%arg0: i32) -> (i32, i32) {
    %c0_i32 = arith.constant 0 : i32
    %c0_i32_0 = arith.constant 0 : i32
    return %arg0, %c0_i32 : i32, i32
  }
  func.func @transform_2(%arg0: i32) -> (i32, i32) {
    %c0_i32 = arith.constant 0 : i32
    %c0_i32_0 = arith.constant 0 : i32
    %c0_i32_1 = arith.constant 0 : i32
    return %c0_i32, %c0_i32_0 : i32, i32
  }
}

</mosaic_0001>

<bundles_post_ra>
// kernel: tpu_custom_call.1
= control target key start
LH: loop header
LB: loop body
LE: loop exit
PB: predicated region body
PF: predicated region fallthrough
CT: control target
= control target key end

     0   :  { %7 = vsyncpa [#allocation3], 0  ;;  %s252_s0 = inlined_call_operand.hbm [shape: f32[16,128], index: 0, kind: input, shape index: {}]   ;;  %s253_s1 = inlined_call_operand.hbm [shape: f32[16,128], index: 1, kind: input, shape index: {}]   ;;  %s254_s2 = inlined_call_operand.hbm [shape: f32[8,128], index: 2, kind: output, shape index: {}]  }
   0x1   :  { %8 = vsyncpa [#allocation6], 0 }
   0x2   :  { %9 = vsyncpa [#allocation4], 0  ;;  %s215_s9 = smov [#allocation2]  }
   0x3   :  { %s15_s10 = sshll.u32 %s215_s9, 4  ;;  %s16_s10 = int_to_ptr.vmem [resolvable:$true] %s15_s10 }
   0x4   :  { %s157_s11 = scalar_lea.vmem %s16_s10, 256  ;;  %p162_p1 = scmp.lt.s32.totalorder %s16_s10, %s16_s10 }
   0x5   :  { %p158_p0 = scmp.ne.s32.totalorder %s16_s10, %s157_s11  ;;  %p163_p2 = scmp.lt.s32.totalorder %s157_s11, %s157_s11 }
   0x7   :  { %p164_p3 = por %p163_p2, %p162_p1 }
   0x9   :  { %p165_p4 = pnand %p164_p3, %p158_p0 }
   0xb   :  { %168 = shalt.err (!%p165_p4)
}
   0xc   :  { %s216_s12 = smov 128   ;;  %s217_s13 = smov 8  }
   0xd   :  { %21 = dma.hbm_to_vmem [thread:$0]  %s252_s0, 256, %s16_s10, [#allocation3], %s216_s12, %s216_s12, %s217_s13  }
   0xe   :  { %s218_s16 = smov [#allocation5]  }
   0xf   :  { %s27_s17 = sshll.u32 %s218_s16, 4  ;;  %s28_s17 = int_to_ptr.vmem [resolvable:$true] %s27_s17 }
  0x10   :  { %s177_s18 = scalar_lea.vmem %s28_s17, 256  ;;  %p182_p6 = scmp.lt.s32.totalorder %s28_s17, %s28_s17 }
  0x11   :  { %p178_p5 = scmp.ne.s32.totalorder %s28_s17, %s177_s18  ;;  %p183_p7 = scmp.lt.s32.totalorder %s177_s18, %s177_s18 }
  0x13   :  { %p184_p8 = por %p183_p7, %p182_p6 }
  0x15   :  { %p185_p9 = pnand %p184_p8, %p178_p5 }
  0x17   :  { %188 = shalt.err (!%p185_p9)
}
  0x18   :  { %33 = dma.hbm_to_vmem [thread:$0]  %s253_s1, 256, %s28_s17, [#allocation6], %s216_s12, %s216_s12, %s217_s13  }
  0x19   :  { %209 = dma.done.wait [#allocation3], 256  }
  0x1a   :  { %210 = vsyncadd [#allocation3], 4294967040 }
  0x1b   :  { %211 = dma.done.wait [#allocation6], 256  }
  0x1c   :  { %212 = vsyncadd [#allocation6], 4294967040  ;;  %v45_v0 = vld [vmem:[#allocation2] sm:$0xff]  ;;  %v46_v1 = vld [vmem:[#allocation2 + $0x8] sm:$0xff]  ;;  %s219_s0 = smov [#allocation7]  }
  0x1d   :  { %v49_v2 = vand.u32 2147483647, %v45_v0  ;;  %v50_v3 = vand.u32 2147483647, %v46_v1  ;;  %v79_v17 = vmax.f32 %v45_v0, 0.0  ;;  %v80_v19 = vmax.f32 %v46_v1, 0.0 }
  0x1e   :  { %v47_v20 = vld [vmem:[#allocation5] sm:$0xff]  ;;  %v48_v21 = vld [vmem:[#allocation5 + $0x8] sm:$0xff]  ;;  %v75_v23 = vmin.f32 %v45_v0, 0.0  ;;  %v76_v26 = vmin.f32 %v46_v1, 0.0  ;;  %vm91_vm2 = vcmp.ge.f32.partialorder %v45_v0, 0.0  ;;  %vm92_vm3 = vcmp.ge.f32.partialorder %v46_v1, 0.0 }
  0x1f   :  { %v51_v4 = vsub.f32 0.0, %v49_v2  ;;  %v52_v5 = vsub.f32 0.0, %v50_v3  ;;  %v81_v27 = vsub.f32 0.0, %v79_v17  ;;  %v82_v30 = vsub.f32 0.0, %v80_v19  ;;  %s121_s1 = sshll.u32 %s219_s0, 4  ;;  %s122_s1 = int_to_ptr.vmem [resolvable:$true] %s121_s1 }
  0x20   :  { %vm101_vm4 = vcmp.eq.f32.partialorder %v47_v20, 1.0  ;;  %vm102_vm5 = vcmp.eq.f32.partialorder %v48_v21, 1.0  ;;  %vm105_vm6 = vcmp.eq.f32.partialorder %v47_v20, 0.0  ;;  %vm106_vm7 = vcmp.eq.f32.partialorder %v48_v21, 0.0  ;;  %s189_s21 = scalar_lea.vmem %s122_s1, 128  ;;  %p194_p11 = scmp.lt.s32.totalorder %s122_s1, %s122_s1 }
  0x21   :  { %v53_v6 = vmul.f32 1.442695, %v51_v4  ;;  %v55_v7 = vmul.f32 1.442695, %v52_v5  ;;  %p190_p10 = scmp.ne.s32.totalorder %s122_s1, %s189_s21  ;;  %p195_p12 = scmp.lt.s32.totalorder %s189_s21, %s189_s21 }
  0x23   :  { %137 = vpow2.f32 %v53_v6  ;;  %p196_p13 = por %p195_p12, %p194_p11 }
  0x24   :  { %139 = vpow2.f32 %v55_v7 }
  0x25   :  { %p197_p0 = pnand %p196_p13, %p190_p10 }
  0x30   :  { %v138_v8 = vpop.eup %137 }
  0x31   :  { %v140_v9 = vpop.eup %139  ;;  %v57_v10 = vadd.f32 1.0, %v138_v8  ;;  %v60_v12 = vmul.f32 -0.5, %v138_v8  ;;  %v63_v15 = vand.u32 2147483647, %v138_v8 }
  0x32   :  { %v66_v11 = vadd.f32 1.0, %v140_v9  ;;  %v69_v13 = vmul.f32 -0.5, %v140_v9  ;;  %v72_v18 = vand.u32 2147483647, %v140_v9 }
  0x33   :  { %141 = vlog2.f32 %v57_v10  ;;  %v61_v14 = vadd.f32 1.0, %v60_v12  ;;  %vm64_vm0 = vcmp.lt.f32.partialorder %v63_v15, 0.0004427343 }
  0x34   :  { %143 = vlog2.f32 %v66_v11  ;;  %v70_v16 = vadd.f32 1.0, %v69_v13  ;;  %vm73_vm1 = vcmp.lt.f32.partialorder %v72_v18, 0.0004427343 }
  0x35   :  { %145 = vrcp.f32 %v57_v10  ;;  %v62_v22 = vmul.f32 %v138_v8, %v61_v14 }
  0x36   :  { %147 = vrcp.f32 %v66_v11  ;;  %v71_v25 = vmul.f32 %v140_v9, %v70_v16 }
  0x40   :  { %v142_v24 = vpop.eup %141 }
  0x41   :  { %v144_v28 = vpop.eup %143  ;;  %v59_v29 = vmul.f32 0.6931472, %v142_v24 }
  0x42   :  { %v146_v31 = vpop.eup %145  ;;  %v68_v32 = vmul.f32 0.6931472, %v144_v28 }
  0x43   :  { %v148_v33 = vpop.eup %147  ;;  %v65_v34 = vsel %vm64_vm0, %v62_v22, %v59_v29  ;;  %v89_v35 = vmul.f32 %v146_v31, %v138_v8 }
  0x44   :  { %v74_v36 = vsel %vm73_vm1, %v71_v25, %v68_v32  ;;  %v77_v37 = vsub.f32 %v75_v23, %v65_v34  ;;  %v83_v38 = vsub.f32 %v81_v27, %v65_v34  ;;  %v90_v39 = vmul.f32 %v148_v33, %v140_v9 }
  0x45   :  { %v78_v40 = vsub.f32 %v76_v26, %v74_v36  ;;  %v84_v41 = vsub.f32 %v82_v30, %v74_v36  ;;  %v93_v42 = vsel %vm91_vm2, %v146_v31, %v89_v35  ;;  %v95_v43 = vsel %vm91_vm2, %v89_v35, %v146_v31 }
  0x46   :  { %v94_v44 = vsel %vm92_vm3, %v148_v33, %v90_v39  ;;  %v96_v45 = vsel %vm92_vm3, %v90_v39, %v148_v33  ;;  %v97_v46 = vmul.f32 %v95_v43, %v77_v37  ;;  %v99_v47 = vmul.f32 %v93_v42, %v83_v38 }
  0x47   :  { %v98_v48 = vmul.f32 %v96_v45, %v78_v40  ;;  %v100_v49 = vmul.f32 %v94_v44, %v84_v41 }
  0x48   :  { %v103_v50 = vsel %vm101_vm4, %v97_v46, 0.0  ;;  %v107_v51 = vsel %vm105_vm6, %v99_v47, 0.0 }
  0x49   :  { %v104_v52 = vsel %vm102_vm5, %v98_v48, 0.0  ;;  %v108_v53 = vsel %vm106_vm7, %v100_v49, 0.0  ;;  %v109_v54 = vadd.f32 %v107_v51, %v103_v50 }
  0x4a   :  { %v110_v55 = vadd.f32 %v108_v53, %v104_v52 }
  0x4c   :  { %v112_v56 = vadd.f32 %v110_v55, %v109_v54 }
  0x4e   :  { %114 = vst [vmem:[#allocation7] sm:$0xff] %v112_v56 }
  0x4f   :  { %200 = shalt.err (!%p197_p0)
}
  0x50   :  { %124 = dma.vmem_to_hbm [thread:$0]  %s122_s1, 128, %s254_s2, [#allocation4]  }
  0x51   :  { %213 = dma.done.wait [#allocation4], 128  }
  0x52   :  { %214 = vsyncadd [#allocation4], 4294967168 }
  0x53   :  { %128 = vsyncpa [#allocation3], 1 }
  0x54   :  { %129 = vsyncpa [#allocation6], 1 }
  0x55   :  { %130 = vsyncpa [#allocation4], 1 }

</bundles_post_ra>
